<compile_context>
chip_gen: v7x
topology: tpu7x:2x2x1
jax: 0.10.0
libtpu: 0.0.40
codegen_flags: <defaults>
</compile_context>

<pallas_src>
import jax
import jax.numpy as jnp
from jax.experimental import pallas as pl
from jax.experimental.pallas import tpu as pltpu

_LANE = 128      # TPU lane width (last-dim alignment target)
_SUBLANE = 16    # sublane alignment that also satisfies bf16 packing


def _round_up(x, m):
    return (x + m - 1) // m * m


def _cdiv(a, b):
    return -(-a // b)


# ---------------------------------------------------------------------------
# One-time capability / hardware queries (cached in module globals).
# ---------------------------------------------------------------------------
_VMEM_CAP = None
_BUFFERED1 = None


def _vmem_capacity_bytes():
    """Physical VMEM per core; conservative 64 MiB fallback (v7x per-TC)."""
    global _VMEM_CAP
    if _VMEM_CAP is None:
        cap = None
        try:
            info = pltpu.get_tpu_info()
            cap = getattr(info, "vmem_capacity_bytes", None)
        except Exception:
            cap = None
        _VMEM_CAP = int(cap) if cap else 64 * 1024 * 1024
    return _VMEM_CAP


def _buffered1_supported():
    """One-time probe: can the auto-pipeliner single-buffer a constant block?"""
    global _BUFFERED1
    if _BUFFERED1 is None:
        ok = False
        if hasattr(pl, "Buffered"):
            try:
                def _probe(a_ref, o_ref):
                    o_ref[...] = a_ref[...]
                fn = pl.pallas_call(
                    _probe,
                    out_shape=jax.ShapeDtypeStruct((8, _LANE), jnp.float32),
                    grid=(1,),
                    in_specs=[pl.BlockSpec((8, _LANE), lambda i: (0, 0),
                                           pipeline_mode=pl.Buffered(1))],
                    out_specs=pl.BlockSpec((8, _LANE), lambda i: (0, 0)),
                )
                jax.block_until_ready(fn(jnp.zeros((8, _LANE), jnp.float32)))
                ok = True
            except Exception:
                ok = False
        _BUFFERED1 = ok
    return _BUFFERED1


# ---------------------------------------------------------------------------
# Kernel
# ---------------------------------------------------------------------------
def mlp_kernel(x_ref, w1_ref, b1_ref, w2_ref, b2_ref, o_ref):
    """Fused Linear -> ReLU -> Linear for one batch tile.

    x_ref:  (TB, D_in)    f32 input tile (cast to bf16 in-kernel; VPU cast
                          rides in spare VALU slots while the MXU runs)
    w1_ref: (D_in, H_p)   bf16 first-layer weight (VMEM resident)
    b1_ref: (1, H_p)      f32 first-layer bias
    w2_ref: (H_p, D_out)  bf16 second-layer weight (VMEM resident)
    b2_ref: (1, D_out)    f32 second-layer bias
    o_ref:  (TB, D_out)   output tile
    """
    x = x_ref[...].astype(w1_ref.dtype)
    # First MXU pass: f32 accumulation, f32 bias + ReLU epilogue.
    h = jnp.dot(x, w1_ref[...], preferred_element_type=jnp.float32)
    h = jnp.maximum(h + b1_ref[...], 0.0)
    # Second MXU pass.
    h = h.astype(w2_ref.dtype)
    out = jnp.dot(h, w2_ref[...], preferred_element_type=jnp.float32) + b2_ref[...]
    o_ref[...] = out.astype(o_ref.dtype)


def _build_call(batch, tile, steps, d_in, h_p, d_out, out_dtype, vmem_limit,
                single_buffer_weights):
    if single_buffer_weights:
        # Constant index_map -> double-buffering these would be pure VMEM waste.
        w_kwargs = dict(pipeline_mode=pl.Buffered(1))
    else:
        w_kwargs = {}
    return pl.pallas_call(
        mlp_kernel,
        out_shape=jax.ShapeDtypeStruct((batch, d_out), out_dtype),
        grid=(steps,),
        in_specs=[
            # Input: tiled along the batch axis only; full (unpadded) D_in.
            pl.BlockSpec((tile, d_in), lambda i: (i, 0)),
            # Weights / biases: full arrays, resident in VMEM.
            pl.BlockSpec((d_in, h_p), lambda i: (0, 0), **w_kwargs),
            pl.BlockSpec((1, h_p), lambda i: (0, 0), **w_kwargs),
            pl.BlockSpec((h_p, d_out), lambda i: (0, 0), **w_kwargs),
            pl.BlockSpec((1, d_out), lambda i: (0, 0), **w_kwargs),
        ],
        out_specs=pl.BlockSpec((tile, d_out), lambda i: (i, 0)),
        compiler_params=pltpu.CompilerParams(
            dimension_semantics=("parallel",),
            vmem_limit_bytes=vmem_limit,
        ),
    )


# ---------------------------------------------------------------------------
# Wrapper: caches padded/cast parameters and compiled calls across invocations.
# ---------------------------------------------------------------------------
class LearnerMLP:
    """Pallas-backed forward of Learner's dense 'mlp' network."""

    def __init__(self, w1, b1, w2, b2, *, compute_dtype=jnp.bfloat16,
                 out_dtype=jnp.float32, tile_b=512):
        w1 = jnp.asarray(w1)
        b1 = jnp.asarray(b1)
        w2 = jnp.asarray(w2)
        b2 = jnp.asarray(b2)
        self.d_in, self.h = w1.shape
        self.d_out = w2.shape[1]
        self.compute_dtype = compute_dtype
        self.out_dtype = out_dtype
        self.tile_b = int(tile_b)

        # Pad ONLY the hidden dim (zero-pad of a contracted dim is exact) and
        # only if it is not already lane-aligned.  Done once, cached on self —
        # no per-call padded/cast copies of the parameters.
        h_p = _round_up(self.h, _LANE)
        self.h_p = h_p
        if h_p == self.h:
            self.w1 = w1.astype(compute_dtype)
            self.b1 = b1.reshape(1, self.h).astype(jnp.float32)
            self.w2 = w2.astype(compute_dtype)
        else:
            self.w1 = jnp.zeros((self.d_in, h_p), compute_dtype).at[:, :self.h].set(
                w1.astype(compute_dtype))
            self.b1 = jnp.zeros((1, h_p), jnp.float32).at[:, :self.h].set(
                b1.reshape(1, self.h).astype(jnp.float32))
            self.w2 = jnp.zeros((h_p, self.d_out), compute_dtype).at[:self.h, :].set(
                w2.astype(compute_dtype))
        self.b2 = b2.reshape(1, self.d_out).astype(jnp.float32)
        self._calls = {}

    # --- VMEM accounting -------------------------------------------------
    def _vmem_need(self, tile, single_buffer):
        wb = jnp.dtype(self.compute_dtype).itemsize
        ob = jnp.dtype(self.out_dtype).itemsize
        # x tile stays f32 (cast happens in-kernel); x / out double-buffered.
        io_tiles = 2 * tile * (self.d_in * 4 + self.d_out * ob)
        wmul = 1 if single_buffer else 2
        weights = wmul * ((self.d_in * self.h_p + self.h_p * self.d_out) * wb
                          + (self.h_p + self.d_out) * 4)
        hidden = tile * self.h_p * 4          # f32 hidden intermediate
        return io_tiles + weights + hidden

    # --- tile / grid planning ---------------------------------------------
    def _plan(self, batch):
        single_buffer = _buffered1_supported()
        cap = _vmem_capacity_bytes()
        shrink_budget = (3 * cap) // 4        # ~48 MiB on v7x, ~96 MiB on v5e/v6e

        tile = min(_round_up(self.tile_b, _SUBLANE), _round_up(batch, _SUBLANE))
        while self._vmem_need(tile, single_buffer) > shrink_budget and tile > _SUBLANE:
            tile = max(_SUBLANE, _round_up(tile // 2, _SUBLANE))

        # Balance the tail: keep the same number of steps, shrink the tile to
        # just cover B (sublane-aligned) instead of padding a whole extra tile.
        steps = _cdiv(batch, tile)
        tile = _round_up(_cdiv(batch, steps), _SUBLANE)

        # v7x megacore: make sure the "parallel" grid axis has >= 2 steps.
        if steps == 1 and batch >= 2 * _SUBLANE:
            tile = _round_up(_cdiv(batch, 2), _SUBLANE)
        steps = _cdiv(batch, tile)

        need = self._vmem_need(tile, single_buffer)
        vmem_limit = int(min(max(need + need // 4, 32 << 20), cap - (8 << 20)))
        return tile, steps, vmem_limit, single_buffer

    def __call__(self, x):
        batch = x.shape[0]
        tile, steps, vmem_limit, single_buffer = self._plan(batch)
        key = (batch, tile, steps, vmem_limit, single_buffer)
        fn = self._calls.get(key)
        if fn is None:
            call = _build_call(batch, tile, steps, self.d_in, self.h_p,
                               self.d_out, self.out_dtype, vmem_limit,
                               single_buffer)
            fn = jax.jit(call)
            self._calls[key] = fn
        return fn(x, self.w1, self.b1, self.w2, self.b2)


def _ref_forward(x, w1, b1, w2, b2, compute_dtype):
    """Pure-JAX reference matching the kernel's math (Linear -> ReLU -> Linear)."""
    xc = x.astype(compute_dtype)
    w1c = w1.astype(compute_dtype)
    w2c = w2.astype(compute_dtype)
    h = jnp.dot(xc, w1c, preferred_element_type=jnp.float32) + b1.reshape(1, -1)
    h = jnp.maximum(h, 0.0).astype(compute_dtype)
    return (jnp.dot(h, w2c, preferred_element_type=jnp.float32)
            + b2.reshape(1, -1))


if __name__ == "__main__":
    # Small shapes consistent with an MLP Learner: batch=16, in=32, hidden=64, out=8.
    B, D_IN, H, D_OUT = 16, 32, 64, 8

    key = jax.random.PRNGKey(0)
    kx, kw1, kb1, kw2, kb2 = jax.random.split(key, 5)

    x = jax.random.normal(kx, (B, D_IN), dtype=jnp.float32)
    # Deterministic parameter init (Kaiming-ish), stored pre-transposed so the
    # kernel computes x @ W + b directly.
    w1 = jax.random.normal(kw1, (D_IN, H), dtype=jnp.float32) * (1.0 / jnp.sqrt(D_IN))
    b1 = jax.random.normal(kb1, (1, H), dtype=jnp.float32) * 0.01
    w2 = jax.random.normal(kw2, (H, D_OUT), dtype=jnp.float32) * (1.0 / jnp.sqrt(H))
    b2 = jax.random.normal(kb2, (1, D_OUT), dtype=jnp.float32) * 0.01

    net = LearnerMLP(w1, b1, w2, b2)
    out = jax.block_until_ready(net(x))
    assert out.shape == (B, D_OUT)

    # Tight check vs. a reference using the same bf16-operand / f32-accumulate math.
    ref_bf16 = _ref_forward(x, w1, b1, w2, b2, jnp.bfloat16)
    assert jnp.allclose(out, ref_bf16, atol=2e-3, rtol=2e-3), \
        "Pallas output mismatch vs bf16 reference"

    # Loose sanity check vs. full-f32 math (bf16 quantization error only).
    ref_f32 = _ref_forward(x, w1, b1, w2, b2, jnp.float32)
    assert jnp.allclose(out, ref_f32, atol=1e-1, rtol=1e-1), \
        "Pallas output mismatch vs f32 reference"

    # Second call reuses the cached compiled kernel and cached cast weights.
    out2 = jax.block_until_ready(net(x))
    assert jnp.allclose(out, out2)

    print("KERNEL_OK")
</pallas_src>

<mosaic_0001>
module attributes {stable_mosaic.version = 11 : i64} {
  func.func @_probe(%arg0: i32, %arg1: memref<8x128xf32, #tpu.memory_space<vmem>>, %arg2: memref<8x128xf32, #tpu.memory_space<vmem>>) attributes {dimension_semantics = [#tpu.dimension_semantics<arbitrary>], iteration_bounds = array<i64: 1>, scalar_prefetch = 0 : i64, scratch_operands = 0 : i64, tpu.core_type = #tpu.core_type<tc>, window_params = [{pipeline_mode = #tpu.pipeline_mode<synchronous>, transform_indices = @transform_0, window_bounds = array<i64: 8, 128>}, {pipeline_mode = #tpu.pipeline_mode<synchronous>, transform_indices = @transform_1, window_bounds = array<i64: 8, 128>}]} {
    %c0 = arith.constant 0 : index
    %c0_0 = arith.constant 0 : index
    %0 = vector.load %arg1[%c0, %c0_0] : memref<8x128xf32, #tpu.memory_space<vmem>>, vector<8x128xf32>
    %c0_1 = arith.constant 0 : index
    %c0_2 = arith.constant 0 : index
    %1 = vector.load %arg2[%c0_1, %c0_2] : memref<8x128xf32, #tpu.memory_space<vmem>>, vector<8x128xf32>
    tpu.vector_store %arg2[%c0_1, %c0_2], %0 {strides = array<i32>} : memref<8x128xf32, #tpu.memory_space<vmem>>, vector<8x128xf32>,
    return
  }
  func.func @transform_0(%arg0: i32) -> (i32, i32) {
    %c0_i32 = arith.constant 0 : i32
    %c0_i32_0 = arith.constant 0 : i32
    %c0_i32_1 = arith.constant 0 : i32
    return %c0_i32, %c0_i32_0 : i32, i32
  }
  func.func @transform_1(%arg0: i32) -> (i32, i32) {
    %c0_i32 = arith.constant 0 : i32
    %c0_i32_0 = arith.constant 0 : i32
    %c0_i32_1 = arith.constant 0 : i32
    return %c0_i32, %c0_i32_0 : i32, i32
  }
}

module attributes {stable_mosaic.version = 11 : i64} {
  func.func @mlp_kernel(%arg0: i32, %arg1: memref<16x32xf32, #tpu.memory_space<vmem>>, %arg2: memref<32x128xbf16, #tpu.memory_space<vmem>>, %arg3: memref<1x128xf32, #tpu.memory_space<vmem>>, %arg4: memref<128x8xbf16, #tpu.memory_space<vmem>>, %arg5: memref<1x8xf32, #tpu.memory_space<vmem>>, %arg6: memref<16x8xf32, #tpu.memory_space<vmem>>) attributes {dimension_semantics = [#tpu.dimension_semantics<parallel>], iteration_bounds = array<i64: 1>, scalar_prefetch = 0 : i64, scratch_operands = 0 : i64, tpu.core_type = #tpu.core_type<tc>, window_params = [{transform_indices = @transform_0, window_bounds = array<i64: 16, 32>}, {pipeline_mode = #tpu.pipeline_mode<synchronous>, transform_indices = @transform_1, window_bounds = array<i64: 32, 128>}, {pipeline_mode = #tpu.pipeline_mode<synchronous>, transform_indices = @transform_2, window_bounds = array<i64: 1, 128>}, {pipeline_mode = #tpu.pipeline_mode<synchronous>, transform_indices = @transform_3, window_bounds = array<i64: 128, 8>}, {pipeline_mode = #tpu.pipeline_mode<synchronous>, transform_indices = @transform_4, window_bounds = array<i64: 1, 8>}, {transform_indices = @transform_5, window_bounds = array<i64: 16, 8>}]} {
    %c0 = arith.constant 0 : index
    %c0_0 = arith.constant 0 : index
    %0 = vector.load %arg1[%c0, %c0_0] : memref<16x32xf32, #tpu.memory_space<vmem>>, vector<16x32xf32>
    %1 = arith.truncf %0 : vector<16x32xf32> to vector<16x32xbf16>
    %c0_1 = arith.constant 0 : index
    %c0_2 = arith.constant 0 : index
    %2 = vector.load %arg2[%c0_1, %c0_2] : memref<32x128xbf16, #tpu.memory_space<vmem>>, vector<32x128xbf16>
    %cst = arith.constant dense<0.000000e+00> : vector<16x128xf32>
    %3 = tpu.matmul %1, %2, %cst {dimension_numbers = #tpu.dot_dimension_numbers<[1], [0], [0], [1], [0, 0, 1, 1], [], []>} : vector<16x32xbf16>, vector<32x128xbf16>, vector<16x128xf32> -> vector<16x128xf32>
    %c0_3 = arith.constant 0 : index
    %c0_4 = arith.constant 0 : index
    %4 = vector.load %arg3[%c0_3, %c0_4] : memref<1x128xf32, #tpu.memory_space<vmem>>, vector<1x128xf32>
    %5 = vector.broadcast %4 : vector<1x128xf32> to vector<16x128xf32>
    %6 = arith.addf %3, %5 : vector<16x128xf32>
    %cst_5 = arith.constant 0.000000e+00 : f32
    %7 = vector.broadcast %cst_5 : f32 to vector<16x128xf32>
    %8 = arith.maximumf %6, %7 : vector<16x128xf32>
    %9 = arith.truncf %8 : vector<16x128xf32> to vector<16x128xbf16>
    %c0_6 = arith.constant 0 : index
    %c0_7 = arith.constant 0 : index
    %10 = vector.load %arg4[%c0_6, %c0_7] : memref<128x8xbf16, #tpu.memory_space<vmem>>, vector<128x8xbf16>
    %cst_8 = arith.constant dense<0.000000e+00> : vector<16x8xf32>
    %11 = tpu.matmul %9, %10, %cst_8 {dimension_numbers = #tpu.dot_dimension_numbers<[1], [0], [0], [1], [0, 0, 1, 1], [], []>} : vector<16x128xbf16>, vector<128x8xbf16>, vector<16x8xf32> -> vector<16x8xf32>
    %c0_9 = arith.constant 0 : index
    %c0_10 = arith.constant 0 : index
    %12 = vector.load %arg5[%c0_9, %c0_10] : memref<1x8xf32, #tpu.memory_space<vmem>>, vector<1x8xf32>
    %13 = vector.broadcast %12 : vector<1x8xf32> to vector<16x8xf32>
    %14 = arith.addf %11, %13 : vector<16x8xf32>
    %c0_11 = arith.constant 0 : index
    %c0_12 = arith.constant 0 : index
    %15 = vector.load %arg6[%c0_11, %c0_12] : memref<16x8xf32, #tpu.memory_space<vmem>>, vector<16x8xf32>
    tpu.vector_store %arg6[%c0_11, %c0_12], %14 {strides = array<i32>} : memref<16x8xf32, #tpu.memory_space<vmem>>, vector<16x8xf32>,
    return
  }
  func.func @transform_0(%arg0: i32) -> (i32, i32) {
    %c0_i32 = arith.constant 0 : i32
    %c0_i32_0 = arith.constant 0 : i32
    return %arg0, %c0_i32 : i32, i32
  }
  func.func @transform_1(%arg0: i32) -> (i32, i32) {
    %c0_i32 = arith.constant 0 : i32
    %c0_i32_0 = arith.constant 0 : i32
    %c0_i32_1 = arith.constant 0 : i32
    return %c0_i32, %c0_i32_0 : i32, i32
  }
  func.func @transform_2(%arg0: i32) -> (i32, i32) {
    %c0_i32 = arith.constant 0 : i32
    %c0_i32_0 = arith.constant 0 : i32
    %c0_i32_1 = arith.constant 0 : i32
    return %c0_i32, %c0_i32_0 : i32, i32
  }
  func.func @transform_3(%arg0: i32) -> (i32, i32) {
    %c0_i32 = arith.constant 0 : i32
    %c0_i32_0 = arith.constant 0 : i32
    %c0_i32_1 = arith.constant 0 : i32
    return %c0_i32, %c0_i32_0 : i32, i32
  }
  func.func @transform_4(%arg0: i32) -> (i32, i32) {
    %c0_i32 = arith.constant 0 : i32
    %c0_i32_0 = arith.constant 0 : i32
    %c0_i32_1 = arith.constant 0 : i32
    return %c0_i32, %c0_i32_0 : i32, i32
  }
  func.func @transform_5(%arg0: i32) -> (i32, i32) {
    %c0_i32 = arith.constant 0 : i32
    %c0_i32_0 = arith.constant 0 : i32
    return %arg0, %c0_i32 : i32, i32
  }
}

</mosaic_0001>

<bundles_post_ra>
// kernel: tpu_custom_call.1
= control target key start
LH: loop header
LB: loop body
LE: loop exit
PB: predicated region body
PF: predicated region fallthrough
CT: control target
= control target key end

     0   :  { %6 = vsyncpa [#allocation3], 0  ;;  %s124_s0 = inlined_call_operand.hbm [shape: f32[8,128], index: 0, kind: input, shape index: {}]   ;;  %s125_s1 = inlined_call_operand.hbm [shape: f32[8,128], index: 1, kind: output, shape index: {}]  }
   0x1   :  { %7 = vsyncpa [#allocation4], 0  ;;  %s88_s6 = smov [#allocation2]   ;;  %s40_s10 = scalar_lea.hbm %s124_s0, 128 }
   0x2   :  { %s14_s7 = sshll.u32 %s88_s6, 4  ;;  %p41_p0 = scmp.ne.s32.totalorder %s124_s0, %s40_s10  ;;  %s15_s7 = int_to_ptr.vmem [resolvable:$true] %s14_s7 }
   0x3   :  { %p44_p1 = scmp.lt.u32.totalorder %s40_s10, %s124_s0 }
   0x5   :  { %p46_p2 = pnand %p44_p1, %p41_p0 }
   0x7   :  { %49 = shalt.err (!%p46_p2)
}
   0x8   :  { %s50_s15 = scalar_lea.vmem %s15_s7, 128  ;;  %p55_p4 = scmp.lt.s32.totalorder %s15_s7, %s15_s7 }
   0x9   :  { %p51_p3 = scmp.ne.s32.totalorder %s15_s7, %s50_s15  ;;  %p56_p5 = scmp.lt.s32.totalorder %s50_s15, %s50_s15 }
   0xb   :  { %p57_p6 = por %p56_p5, %p55_p4 }
   0xd   :  { %p58_p7 = pnand %p57_p6, %p51_p3 }
   0xf   :  { %61 = shalt.err (!%p58_p7)
}
  0x10   :  { %17 = dma.hbm_to_vmem [thread:$0]  %s124_s0, 128, %s15_s7, [#allocation3]  }
  0x11   :  { %84 = dma.done.wait [#allocation3], 128  }
  0x12   :  { %85 = vsyncadd [#allocation3], 4294967168  ;;  %s89_s18 = smov [#allocation5]   ;;  %v21_v0 = vld [vmem:[#allocation2] sm:$0xff] }
  0x13   :  { %s29_s19 = sshll.u32 %s89_s18, 4  ;;  %22 = vst [vmem:[#allocation5] sm:$0xff] %v21_v0  ;;  %s30_s19 = int_to_ptr.vmem [resolvable:$true] %s29_s19 }
  0x14   :  { %s62_s20 = scalar_lea.vmem %s30_s19, 128  ;;  %p67_p9 = scmp.lt.s32.totalorder %s30_s19, %s30_s19 }
  0x15   :  { %p63_p8 = scmp.ne.s32.totalorder %s30_s19, %s62_s20  ;;  %p68_p10 = scmp.lt.s32.totalorder %s62_s20, %s62_s20 }
  0x17   :  { %p69_p11 = por %p68_p10, %p67_p9 }
  0x19   :  { %p70_p12 = pnand %p69_p11, %p63_p8 }
  0x1b   :  { %73 = shalt.err (!%p70_p12)
}
  0x1c   :  { %s74_s23 = scalar_lea.hbm %s125_s1, 128 }
  0x1d   :  { %p75_p13 = scmp.ne.s32.totalorder %s125_s1, %s74_s23  ;;  %p78_p0 = scmp.lt.u32.totalorder %s74_s23, %s125_s1 }
  0x1f   :  { %p80_p1 = pnand %p78_p0, %p75_p13 }
  0x21   :  { %83 = shalt.err (!%p80_p1)
}
  0x22   :  { %32 = dma.vmem_to_hbm [thread:$0]  %s30_s19, 128, %s125_s1, [#allocation4]  }
  0x23   :  { %86 = dma.done.wait [#allocation4], 128  }
  0x24   :  { %87 = vsyncadd [#allocation4], 4294967168 }
  0x25   :  { %36 = vsyncpa [#allocation3], 1 }
  0x26   :  { %37 = vsyncpa [#allocation4], 1 }

// kernel: tpu_custom_call.1
= control target key start
LH: loop header
LB: loop body
LE: loop exit
PB: predicated region body
PF: predicated region fallthrough
CT: control target
= control target key end

     0   :  { %v279_v0 = vmov 0.0   ;;  %vm280_vm0 = vmmov 0   ;;  %vm47_vm1 = vcmask 261120   ;;  %vm207_vm2 = vcmask 64512   ;;  %s359_s1 = inlined_call_operand.vmem [shape: bf16[32,128], index: 1, kind: input, shape index: {}]   ;;  %s360_s0 = inlined_call_operand.vmem [shape: f32[16,32], index: 0, kind: input, shape index: {}]   ;;  %s361_s3 = inlined_call_operand.vmem [shape: bf16[128,8], index: 3, kind: input, shape index: {}]   ;;  %s362_s2 = inlined_call_operand.vmem [shape: f32[1,128], index: 2, kind: input, shape index: {}]   ;;  %s363_s4 = inlined_call_operand.vmem [shape: f32[1,8], index: 4, kind: input, shape index: {}]   ;;  %s364_s5 = inlined_call_operand.vmem [shape: f32[16,8], index: 5, kind: output, shape index: {}]  }
   0x1   :  { %239 = vmatprep.subr.bf16.mxu0 %v279_v0  ;;  %v269_v1 = vld [vmem:[%s359_s1] sm:$0xff]   ;;  %243 = vmatprep.mubr.msk.bf16.mxu0 %vm280_vm0, %v279_v0  ;;  %v270_v2 = vld [vmem:[%s359_s1 + $0x8] sm:$0xff]   ;;  %v273_v8 = vld [vmem:[%s361_s3 + $0x10] sm:$0xff]  }
   0x2   :  { %247 = vmatprep.subr.bf16.mxu1 %v279_v0  ;;  %263 = vmatprep.mubr.msk.bf16.mxu1 %vm280_vm0, %v279_v0  ;;  %v21_v3 = vld [vmem:[%s360_s0] sm:$0xff]  ;;  %v22_v4 = vld [vmem:[%s360_s0 + $0x8] sm:$0xff]  ;;  %v274_v9 = vld [vmem:[%s361_s3 + $0x18] sm:$0xff]  }
   0x3   :  { %240 = vmatpush3.bf16.msra.mxu0 %v269_v1  ;;  %v271_v5 = vld [vmem:[%s361_s3] sm:$0xff]   ;;  %v23_v6 = vpack.c.bf16 %v22_v4, %v21_v3  ;;  %v272_v7 = vld [vmem:[%s361_s3 + $0x8] sm:$0xff]   ;;  %v277_v12 = vld [vmem:[%s361_s3 + $0x30] sm:$0xff]  }
   0x4   :  { %241 = vmatprep.subr.bf16.mxu0 %v279_v0  ;;  %248 = vmatpush3.bf16.msra.mxu1 %v271_v5  ;;  %v275_v10 = vld [vmem:[%s361_s3 + $0x20] sm:$0xff]   ;;  %v276_v11 = vld [vmem:[%s361_s3 + $0x28] sm:$0xff]   ;;  %v278_v13 = vld [vmem:[%s361_s3 + $0x38] sm:$0xff]  }
   0x5   :  { %249 = vmatprep.subr.bf16.mxu1 %v279_v0  ;;  %v214_v14 = vld [vmem:[%s362_s2] ss:$0 sm:$0xff] }
   0x6   :  { %v218_v24 = vld [vmem:[%s363_s4] ss:$0 sm:$0xff] }
   0x7   :  { %242 = vmatpush3.bf16.msra.mxu0 %v270_v2 }
   0x8   :  { %250 = vmatpush3.bf16.msra.mxu1 %v272_v7 }
   0x9   :  { %251 = vmatprep.subr.bf16.mxu1 %v279_v0 }
   0xa   :  { %244 = vmatmul.mubr.msk.bf16.vlgmr.msra.gmra.mrb[0].mxu0 %vm47_vm1, %v23_v6 }
   0xc   :  { %252 = vmatpush3.bf16.msra.mxu1 %v273_v8 }
   0xd   :  { %253 = vmatprep.subr.bf16.mxu1 %v279_v0 }
  0x10   :  { %254 = vmatpush3.bf16.msra.mxu1 %v274_v9 }
  0x11   :  { %255 = vmatprep.subr.bf16.mxu1 %v279_v0 }
  0x14   :  { %256 = vmatpush3.bf16.msra.mxu1 %v275_v10 }
  0x15   :  { %257 = vmatprep.subr.bf16.mxu1 %v279_v0 }
  0x18   :  { %258 = vmatpush3.bf16.msra.mxu1 %v276_v11 }
  0x19   :  { %259 = vmatprep.subr.bf16.mxu1 %v279_v0 }
  0x1c   :  { %260 = vmatpush3.bf16.msra.mxu1 %v277_v12 }
  0x1d   :  { %261 = vmatprep.subr.bf16.mxu1 %v279_v0 }
  0x20   :  { %262 = vmatpush3.bf16.msra.mxu1 %v278_v13 }
  0xdd   :  { %v85_v15 = vpop.f32.mrb[0].mxu0 }
  0xde   :  { %v86_v16 = vadd.f32 %v214_v14, %v85_v15  ;;  %v245_v17 = vpop.f32.mrb[1].mxu0 }
  0xdf   :  { %v88_v18 = vpop.f32.mrb[2].mxu0 }
  0xe0   :  { %v89_v19 = vadd.f32 %v214_v14, %v88_v18  ;;  %v246_v20 = vpop.f32.mrb[3].mxu0  ;;  %v92_v21 = vmax.f32 %v86_v16, 0.0 }
  0xe2   :  { %v93_v22 = vmax.f32 %v89_v19, 0.0 }
  0xe4   :  { %v94_v23 = vpack.c.bf16 %v93_v22, %v92_v21 }
  0xe6   :  { %264 = vmatmul.mubr.bf16.vlgmr.msra.gmra.mrb[0].mxu1 %v94_v23 }
 0x1b9   :  { %v200_v25 = vpop.f32.mrb[0].mxu1 }
 0x1ba   :  { %v201_v26 = vadd.f32 %v218_v24, %v200_v25  ;;  %v265_v27 = vpop.f32.mrb[1].mxu1 }
 0x1bb   :  { %v203_v28 = vpop.f32.mrb[2].mxu1 }
 0x1bc   :  { %208 = vst.msk [vmem:[%s364_s5] sm:$0xff] %vm207_vm2, %v201_v26  ;;  %v204_v29 = vadd.f32 %v218_v24, %v203_v28  ;;  %v266_v30 = vpop.f32.mrb[3].mxu1 }
 0x1be   :  { %209 = vst.msk [vmem:[%s364_s5 + $0x8] sm:$0xff] %vm207_vm2, %v204_v29 }

</bundles_post_ra>
